<compile_context>
chip_gen: v7x
topology: tpu7x:2x2x1
jax: 0.10.0
libtpu: 0.0.40
codegen_flags: <defaults>
</compile_context>

<pallas_src>
import functools

import jax
import jax.numpy as jnp
from jax.experimental import pallas as pl
from jax.experimental.pallas import tpu as pltpu

_NEG_LARGE = -1e30  # finite "-inf": exp(_NEG_LARGE - m) underflows to exactly 0


def _round_up(x, m):
    return (x + m - 1) // m * m


def _cdiv(a, b):
    return -(-a // b)


def _vmem_limit_bytes():
    """~85% of physical per-core VMEM (v7x: 64 MiB/TC, v5e/v6e: 128 MiB).

    Falls back to the smallest generation's figure if the query is unavailable
    (e.g. interpret mode), so the budget is always safe.
    """
    try:
        cap = int(pltpu.get_tpu_info().vmem_capacity_bytes)
    except Exception:
        cap = 64 << 20
    return int(cap * 0.85)


def lr_prepare_params(weight, bias, *, param_dtype=jnp.bfloat16):
    """One-time parameter prep (hoisted out of the per-call path).

    weight: (C, D) in nn.Linear layout; bias: (C,).
    Returns:
      w_t:   (D, Cp) param_dtype — transposed, zero-padded classes.
      b_pad: (1, Cp) f32 — real bias in the first C columns, _NEG_LARGE in the
             padded columns so they contribute exactly 0 to the softmax.
    """
    C, D = weight.shape
    assert bias.shape == (C,)
    # Lane-dense class axis: 128-multiple for tiny C, 256-multiple for real-sized
    # C (matches the 256-wide v6e/v7x MXU N dimension).
    lane_mult = 128 if C <= 128 else 256
    Cp = _round_up(max(C, 1), lane_mult)
    w_t = jnp.zeros((D, Cp), param_dtype).at[:, :C].set(weight.T.astype(param_dtype))
    b_pad = jnp.full((1, Cp), _NEG_LARGE, jnp.float32).at[0, :C].set(
        bias.astype(jnp.float32))
    return w_t, b_pad


def _lr_kernel(x_ref, w_ref, b_ref, o_ref, acc_ref, *, d_total, tk, k_partial):
    # x_ref: (TB, TK) input dtype; w_ref: (TK, Cp) param dtype (bf16);
    # b_ref: (1, Cp) f32; o_ref: (TB, Cp); acc_ref: (TB, Cp) f32 scratch.
    k = pl.program_id(1)
    nk = pl.num_programs(1)

    @pl.when(k == 0)
    def _():
        acc_ref[...] = jnp.zeros_like(acc_ref)

    x = x_ref[...]
    w = w_ref[...]
    if k_partial:
        # Last K tile is partial: zero out-of-range x columns AND w rows so
        # out-of-bounds garbage (possibly NaN on real hardware) never reaches
        # the MXU (0 * 0 == 0, regardless of the garbage bits).
        valid = d_total - k * tk
        xcol = jax.lax.broadcasted_iota(jnp.int32, x.shape, 1)
        x = jnp.where(xcol < valid, x, jnp.zeros_like(x))
        wrow = jax.lax.broadcasted_iota(jnp.int32, w.shape, 0)
        w = jnp.where(wrow < valid, w, jnp.zeros_like(w))

    # bf16 matmul on the MXU, f32 accumulation.
    acc_ref[...] += jnp.dot(x.astype(w_ref.dtype), w,
                            preferred_element_type=jnp.float32)

    @pl.when(k == nk - 1)
    def _():
        logits = acc_ref[...] + b_ref[...]
        # Numerically stable softmax over the lane-dense (padded) class axis;
        # padded columns carry bias=_NEG_LARGE -> exp == 0 -> no contribution.
        m = jnp.max(logits, axis=-1, keepdims=True)
        e = jnp.exp(logits - m)
        denom = jnp.sum(e, axis=-1, keepdims=True)
        # Exact division: rows sum to 1 (pl.reciprocal(approx=True) would route
        # to the EUP slot but adds ~1e-3 relative error — not worth it here).
        o_ref[...] = (e / denom).astype(o_ref.dtype)


def lr_forward(x, w_t, b_pad, num_class, *, out_dtype=None,
               force_tb=None, force_tk=None):
    """y = softmax(x @ W^T + b, axis=1) using prepared params from lr_prepare_params.

    x: (B, D); w_t: (D, Cp); b_pad: (1, Cp).  Returns (B, num_class) in out_dtype
    (default: x.dtype; pass jnp.bfloat16 to halve output write bandwidth).
    """
    B, D = x.shape
    Dw, Cp = w_t.shape
    assert Dw == D and b_pad.shape == (1, Cp) and num_class <= Cp
    out_dtype = out_dtype or x.dtype

    limit = _vmem_limit_bytes()
    x_bytes = jnp.dtype(x.dtype).itemsize
    w_bytes = jnp.dtype(w_t.dtype).itemsize
    o_bytes = jnp.dtype(out_dtype).itemsize

    # ---- K split: keep the (double-buffered) weight slab within ~40% of the
    # VMEM limit; on v7x (64 MiB/TC) this kicks in much earlier than on v5e/v6e.
    if force_tk is not None:
        tk = int(force_tk)
    else:
        w_budget = max(1, int(limit * 0.4))
        num_k = max(1, _cdiv(2 * D * Cp * w_bytes, w_budget))
        tk = _round_up(_cdiv(D, num_k), 128)       # lane-aligned K tile
    if tk >= D:
        tk = D                                     # single K step: exact dim
    num_k = _cdiv(D, tk)
    k_partial = (D % tk) != 0

    # ---- batch tile: biggest TB (multiple of 8) that fits the VMEM budget ----
    if force_tb is not None:
        tb = int(force_tb)
    else:
        resident = 2 * tk * Cp * w_bytes + 2 * Cp * 4          # weights + bias
        per_row = 2 * tk * x_bytes + 2 * Cp * o_bytes + Cp * 4  # x/out dbl-buf + acc
        headroom = 2 << 20
        tb = max(8, (limit - resident - headroom) // per_row // 8 * 8)
        tb = min(tb, _round_up(B, 8), 1024)
        if B > 8 and _cdiv(B, tb) < 2:
            # keep >= 2 batch tiles so both v7x TensorCores get work
            tb = max(8, _round_up(_cdiv(B, 2), 8))
    num_b = _cdiv(B, tb)

    kernel = functools.partial(_lr_kernel, d_total=D, tk=tk, k_partial=k_partial)

    out = pl.pallas_call(
        kernel,
        out_shape=jax.ShapeDtypeStruct((B, Cp), out_dtype),
        grid=(num_b, num_k),
        in_specs=[
            pl.BlockSpec((tb, tk), lambda i, k: (i, k)),   # x: streamed, no wrapper copy
            pl.BlockSpec((tk, Cp), lambda i, k: (k, 0)),   # bf16 weights (resident if num_k==1)
            pl.BlockSpec((1, Cp), lambda i, k: (0, 0)),    # padded bias, resident
        ],
        out_specs=pl.BlockSpec((tb, Cp), lambda i, k: (i, 0)),  # lane-dense output slab
        scratch_shapes=[pltpu.VMEM((tb, Cp), jnp.float32)],     # f32 accumulator
        compiler_params=pltpu.CompilerParams(
            dimension_semantics=("parallel", "arbitrary"),
            vmem_limit_bytes=int(limit),
        ),
    )(x, w_t, b_pad)

    # Note: for tiny num_class (e.g. 2) a wrapper-side lane-packing of several
    # rows' classes into one 128-lane slab would cut output traffic further.
    return out[:, :num_class]


if __name__ == "__main__":
    base_key = jax.random.PRNGKey(0)

    def run_case(batch, dimension, num_class, **kw):
        kx, kwt, kb = jax.random.split(jax.random.fold_in(base_key, dimension), 3)
        weight = jax.random.normal(kwt, (num_class, dimension), jnp.float32) * 0.1
        bias = jax.random.normal(kb, (num_class,), jnp.float32) * 0.1
        x = jax.random.normal(kx, (batch, dimension), jnp.float32)

        w_t, b_pad = lr_prepare_params(weight, bias)   # once, at param-load time
        out = jax.block_until_ready(lr_forward(x, w_t, b_pad, num_class, **kw))

        ref = jax.nn.softmax(x @ weight.T + bias[None, :], axis=1)
        assert out.shape == (batch, num_class)
        # bf16 matmul -> ~1e-3-level error vs. the f32 reference.
        assert jnp.allclose(out, ref, atol=1e-2, rtol=1e-2)
        # Exact-division softmax: rows sum to 1.
        assert jnp.allclose(out.sum(axis=1), 1.0, atol=1e-5)
        return out

    # Case matching the module defaults: dimension=32, num_class=2, batch=8.
    run_case(batch=8, dimension=32, num_class=2)
    # Larger case exercising the K-split ("arbitrary" axis + accumulator),
    # the partial-K masking, and the boundary batch tile.
    run_case(batch=24, dimension=192, num_class=5, force_tk=128, force_tb=16)

    print("KERNEL_OK")
</pallas_src>

<mosaic_0001>
module attributes {stable_mosaic.version = 11 : i64} {
  func.func @_lr_kernel(%arg0: i32, %arg1: i32, %arg2: memref<8x32xf32, #tpu.memory_space<vmem>>, %arg3: memref<32x128xbf16, #tpu.memory_space<vmem>>, %arg4: memref<1x128xf32, #tpu.memory_space<vmem>>, %arg5: memref<8x128xf32, #tpu.memory_space<vmem>>, %arg6: memref<8x128xf32, #tpu.memory_space<vmem>>) attributes {dimension_semantics = [#tpu.dimension_semantics<parallel>, #tpu.dimension_semantics<arbitrary>], iteration_bounds = array<i64: 1, 1>, scalar_prefetch = 0 : i64, scratch_operands = 1 : i64, tpu.core_type = #tpu.core_type<tc>, window_params = [{transform_indices = @transform_0, window_bounds = array<i64: 8, 32>}, {transform_indices = @transform_1, window_bounds = array<i64: 32, 128>}, {pipeline_mode = #tpu.pipeline_mode<synchronous>, transform_indices = @transform_2, window_bounds = array<i64: 1, 128>}, {transform_indices = @transform_3, window_bounds = array<i64: 8, 128>}]} {
    %c0_i32 = arith.constant 0 : i32
    %0 = arith.cmpi eq, %arg1, %c0_i32 : i32
    %1 = arith.extui %0 : i1 to i32
    %c0_i32_0 = arith.constant 0 : i32
    %2 = arith.cmpi ne, %1, %c0_i32_0 : i32
    scf.if %2 {
      %cst_10 = arith.constant 0.000000e+00 : f32
      %13 = vector.broadcast %cst_10 : f32 to vector<8x128xf32>
      %c0_11 = arith.constant 0 : index
      %c0_12 = arith.constant 0 : index
      %14 = vector.load %arg6[%c0_11, %c0_12] : memref<8x128xf32, #tpu.memory_space<vmem>>, vector<8x128xf32>
      tpu.vector_store %arg6[%c0_11, %c0_12], %13 {strides = array<i32>} : memref<8x128xf32, #tpu.memory_space<vmem>>, vector<8x128xf32>,
    } else {
    }
    %c0 = arith.constant 0 : index
    %c0_1 = arith.constant 0 : index
    %3 = vector.load %arg2[%c0, %c0_1] : memref<8x32xf32, #tpu.memory_space<vmem>>, vector<8x32xf32>
    %c0_2 = arith.constant 0 : index
    %c0_3 = arith.constant 0 : index
    %4 = vector.load %arg3[%c0_2, %c0_3] : memref<32x128xbf16, #tpu.memory_space<vmem>>, vector<32x128xbf16>
    %c0_4 = arith.constant 0 : index
    %c0_5 = arith.constant 0 : index
    %5 = vector.load %arg6[%c0_4, %c0_5] : memref<8x128xf32, #tpu.memory_space<vmem>>, vector<8x128xf32>
    %6 = arith.truncf %3 : vector<8x32xf32> to vector<8x32xbf16>
    %cst = arith.constant dense<0.000000e+00> : vector<8x128xf32>
    %7 = tpu.matmul %6, %4, %cst {dimension_numbers = #tpu.dot_dimension_numbers<[1], [0], [0], [1], [0, 0, 1, 1], [], []>} : vector<8x32xbf16>, vector<32x128xbf16>, vector<8x128xf32> -> vector<8x128xf32>
    %8 = arith.addf %5, %7 : vector<8x128xf32>
    %c0_6 = arith.constant 0 : index
    %c0_7 = arith.constant 0 : index
    %9 = vector.load %arg6[%c0_6, %c0_7] : memref<8x128xf32, #tpu.memory_space<vmem>>, vector<8x128xf32>
    tpu.vector_store %arg6[%c0_6, %c0_7], %8 {strides = array<i32>} : memref<8x128xf32, #tpu.memory_space<vmem>>, vector<8x128xf32>,
    %c0_i32_8 = arith.constant 0 : i32
    %10 = arith.cmpi eq, %arg1, %c0_i32_8 : i32
    %11 = arith.extui %10 : i1 to i32
    %c0_i32_9 = arith.constant 0 : i32
    %12 = arith.cmpi ne, %11, %c0_i32_9 : i32
    scf.if %12 {
      %c0_10 = arith.constant 0 : index
      %c0_11 = arith.constant 0 : index
      %13 = vector.load %arg6[%c0_10, %c0_11] : memref<8x128xf32, #tpu.memory_space<vmem>>, vector<8x128xf32>
      %c0_12 = arith.constant 0 : index
      %c0_13 = arith.constant 0 : index
      %14 = vector.load %arg4[%c0_12, %c0_13] : memref<1x128xf32, #tpu.memory_space<vmem>>, vector<1x128xf32>
      %15 = vector.broadcast %14 : vector<1x128xf32> to vector<8x128xf32>
      %16 = arith.addf %13, %15 : vector<8x128xf32>
      %cst_14 = arith.constant dense<0xFF800000> : vector<8xf32>
      %17 = vector.multi_reduction <maximumf>, %16, %cst_14 [1] : vector<8x128xf32> to vector<8xf32>
      %18 = vector.shape_cast %17 : vector<8xf32> to vector<8x1xf32>
      %19 = vector.broadcast %18 : vector<8x1xf32> to vector<8x128xf32>
      %20 = arith.subf %16, %19 : vector<8x128xf32>
      %21 = math.exp %20 : vector<8x128xf32>
      %cst_15 = arith.constant dense<0.000000e+00> : vector<8xf32>
      %22 = vector.multi_reduction <add>, %21, %cst_15 [1] : vector<8x128xf32> to vector<8xf32>
      %23 = vector.shape_cast %22 : vector<8xf32> to vector<8x1xf32>
      %24 = vector.broadcast %23 : vector<8x1xf32> to vector<8x128xf32>
      %25 = arith.divf %21, %24 : vector<8x128xf32>
      %c0_16 = arith.constant 0 : index
      %c0_17 = arith.constant 0 : index
      %26 = vector.load %arg5[%c0_16, %c0_17] : memref<8x128xf32, #tpu.memory_space<vmem>>, vector<8x128xf32>
      tpu.vector_store %arg5[%c0_16, %c0_17], %25 {strides = array<i32>} : memref<8x128xf32, #tpu.memory_space<vmem>>, vector<8x128xf32>,
    } else {
    }
    return
  }
  func.func @transform_0(%arg0: i32, %arg1: i32) -> (i32, i32) {
    %c0_i32 = arith.constant 0 : i32
    return %arg0, %arg1 : i32, i32
  }
  func.func @transform_1(%arg0: i32, %arg1: i32) -> (i32, i32) {
    %c0_i32 = arith.constant 0 : i32
    %c0_i32_0 = arith.constant 0 : i32
    return %arg1, %c0_i32 : i32, i32
  }
  func.func @transform_2(%arg0: i32, %arg1: i32) -> (i32, i32) {
    %c0_i32 = arith.constant 0 : i32
    %c0_i32_0 = arith.constant 0 : i32
    %c0_i32_1 = arith.constant 0 : i32
    return %c0_i32, %c0_i32_0 : i32, i32
  }
  func.func @transform_3(%arg0: i32, %arg1: i32) -> (i32, i32) {
    %c0_i32 = arith.constant 0 : i32
    %c0_i32_0 = arith.constant 0 : i32
    return %arg0, %c0_i32 : i32, i32
  }
}

</mosaic_0001>

<bundles_post_ra>
// kernel: tpu_custom_call.1
= control target key start
LH: loop header
LB: loop body
LE: loop exit
PB: predicated region body
PF: predicated region fallthrough
CT: control target
= control target key end

     0   :  { %8 = vsyncpa [#allocation4], 0  ;;  %s323_s0 = inlined_call_operand.hbm [shape: f32[8,32], index: 0, kind: input, shape index: {}]   ;;  %s324_s1 = inlined_call_operand.hbm [shape: bf16[32,128], index: 1, kind: input, shape index: {}]   ;;  %s325_s2 = inlined_call_operand.vmem [shape: f32[1,128], index: 2, kind: input, shape index: {}]   ;;  %s326_s3 = inlined_call_operand.hbm [shape: f32[8,128], index: 3, kind: output, shape index: {}]  }
   0x1   :  { %9 = vsyncpa [#allocation7], 0 }
   0x2   :  { %10 = vsyncpa [#allocation5], 0  ;;  %s250_s12 = smov [#allocation3]   ;;  %s251_s14 = smov [#allocation6]  }
   0x3   :  { %s17_s13 = sshll.u32 %s250_s12, 4  ;;  %s26_s15 = sshll.u32 %s251_s14, 4  ;;  %s18_s13 = int_to_ptr.vmem [resolvable:$true] %s17_s13  ;;  %s277_s15 = int_to_ptr.vmem [resolvable:$true] %s26_s15 }
   0x4   :  { %s178_s18 = scalar_lea.hbm %s323_s0, 128 }
   0x5   :  { %p179_p0 = scmp.ne.s32.totalorder %s323_s0, %s178_s18  ;;  %p182_p1 = scmp.lt.u32.totalorder %s178_s18, %s323_s0 }
   0x7   :  { %p184_p2 = pnand %p182_p1, %p179_p0 }
   0x9   :  { %187 = shalt.err (!%p184_p2)
}
   0xa   :  { %s188_s23 = scalar_lea.vmem %s18_s13, 128  ;;  %p193_p4 = scmp.lt.s32.totalorder %s18_s13, %s18_s13 }
   0xb   :  { %p189_p3 = scmp.ne.s32.totalorder %s18_s13, %s188_s23  ;;  %p194_p5 = scmp.lt.s32.totalorder %s188_s23, %s188_s23 }
   0xd   :  { %p195_p6 = por %p194_p5, %p193_p4 }
   0xf   :  { %p196_p7 = pnand %p195_p6, %p189_p3 }
  0x11   :  { %199 = shalt.err (!%p196_p7)
}
  0x12   :  { %20 = dma.hbm_to_vmem [thread:$0]  %s323_s0, 128, %s18_s13, [#allocation4]  }
  0x13   :  { %s200_s28 = scalar_lea.hbm %s324_s1, 256 }
  0x14   :  { %p201_p8 = scmp.ne.s32.totalorder %s324_s1, %s200_s28  ;;  %p204_p9 = scmp.lt.u32.totalorder %s200_s28, %s324_s1 }
  0x16   :  { %p206_p10 = pnand %p204_p9, %p201_p8 }
  0x18   :  { %209 = shalt.err (!%p206_p10)
}
  0x19   :  { %s210_s6 = scalar_lea.vmem %s277_s15, 256  ;;  %p215_p12 = scmp.lt.s32.totalorder %s277_s15, %s277_s15 }
  0x1a   :  { %p211_p11 = scmp.ne.s32.totalorder %s277_s15, %s210_s6  ;;  %p216_p13 = scmp.lt.s32.totalorder %s210_s6, %s210_s6 }
  0x1c   :  { %p217_p0 = por %p216_p13, %p215_p12 }
  0x1e   :  { %p218_p1 = pnand %p217_p0, %p211_p11 }
  0x20   :  { %221 = shalt.err (!%p218_p1)
}
  0x21   :  { %s252_s0 = smov 64   ;;  %s253_s7 = smov 4  }
  0x22   :  { %32 = dma.hbm_to_vmem [thread:$0]  %s324_s1, 256, %s277_s15, [#allocation7], %s252_s0, %s252_s0, %s253_s7  }
  0x23   :  { %244 = dma.done.wait [#allocation4], 128  }
  0x24   :  { %245 = vsyncadd [#allocation4], 4294967168 }
  0x25   :  { %246 = dma.done.wait [#allocation7], 256  }
  0x26   :  { %247 = vsyncadd [#allocation7], 4294967040  ;;  %v254_v0 = vmov 0.0   ;;  %vm255_vm0 = vmmov 0   ;;  %v172_v1 = vld [vmem:[#allocation6] sm:$0xff]   ;;  %v173_v2 = vld [vmem:[#allocation6 + $0x8] sm:$0xff]  }
  0x27   :  { %157 = vmatprep.subr.bf16.mxu0 %v254_v0  ;;  %161 = vmatprep.mubr.msk.bf16.mxu0 %vm255_vm0, %v254_v0  ;;  %v47_v3 = vld [vmem:[#allocation3] sm:$0xff]  ;;  %vm66_vm1 = vcmask 261120   ;;  %s256_s1 = smov [#allocation8]  }
  0x28   :  { %158 = vmatpush3.bf16.msra.mxu0 %v172_v1  ;;  %v53_v4 = vpack.c.bf16 %v47_v3, %v47_v3  ;;  %v153_v5 = vld [vmem:[%s325_s2] ss:$0 sm:$0xff]  ;;  %s140_s12 = sshll.u32 %s256_s1, 4  ;;  %s141_s12 = int_to_ptr.vmem [resolvable:$true] %s140_s12 }
  0x29   :  { %159 = vmatprep.subr.bf16.mxu0 %v254_v0  ;;  %s222_s2 = scalar_lea.vmem %s141_s12, 128  ;;  %p227_p3 = scmp.lt.s32.totalorder %s141_s12, %s141_s12 }
  0x2a   :  { %p223_p2 = scmp.ne.s32.totalorder %s141_s12, %s222_s2  ;;  %p228_p4 = scmp.lt.s32.totalorder %s222_s2, %s222_s2 }
  0x2c   :  { %160 = vmatpush3.bf16.msra.mxu0 %v173_v2  ;;  %p229_p5 = por %p228_p4, %p227_p3 }
  0x2e   :  { %p230_p6 = pnand %p229_p5, %p223_p2 }
  0x2f   :  { %162 = vmatmul.mubr.msk.bf16.vlgmr.msra.gmra.mrb[0].mxu0 %vm66_vm1, %v53_v4 }
 0x102   :  { %v104_v6 = vpop.f32.mrb[0].mxu0 }
 0x103   :  { %v123_v7 = vadd.f32 %v153_v5, %v104_v6  ;;  %v163_v8 = vpop.f32.mrb[1].mxu0 }
 0x104   :  { %v107_v9 = vpop.f32.mrb[2].mxu0 }
 0x105   :  { %124 = vmax.xlane.f32.xlu0 %v123_v7  ;;  %v164_v10 = vpop.f32.mrb[3].mxu0 }
 0x192   :  { %v125_v11 = vpop.xlane.xlu0 %124 }
 0x193   :  { %v126_v12 = vsub.f32 %v123_v7, %v125_v11 }
 0x195   :  { %v127_v13 = vmul.f32 1.442695, %v126_v12 }
 0x197   :  { %174 = vpow2.f32 %v127_v13 }
 0x1a1   :  { %v175_v14 = vpop.eup %174 }
 0x1a2   :  { %129 = vadd.xlane.f32.xlu0 %v175_v14 }
 0x22f   :  { %v130_v15 = vpop.xlane.xlu0 %129 }
 0x230   :  { %176 = vrcp.f32 %v130_v15 }
 0x23a   :  { %v177_v16 = vpop.eup %176 }
 0x23b   :  { %v132_v17 = vmul.f32 %v177_v16, %v175_v14 }
 0x23d   :  { %133 = vst [vmem:[#allocation8] sm:$0xff] %v132_v17 }
 0x23e   :  { %233 = shalt.err (!%p230_p6)
}
 0x23f   :  { %s234_s15 = scalar_lea.hbm %s326_s3, 128 }
 0x240   :  { %p235_p7 = scmp.ne.s32.totalorder %s326_s3, %s234_s15  ;;  %p238_p8 = scmp.lt.u32.totalorder %s234_s15, %s326_s3 }
 0x242   :  { %p240_p9 = pnand %p238_p8, %p235_p7 }
 0x244   :  { %243 = shalt.err (!%p240_p9)
}
 0x245   :  { %143 = dma.vmem_to_hbm [thread:$0]  %s141_s12, 128, %s326_s3, [#allocation5]  }
 0x246   :  { %248 = dma.done.wait [#allocation5], 128  }
 0x247   :  { %249 = vsyncadd [#allocation5], 4294967168 }
 0x248   :  { %147 = vsyncpa [#allocation4], 1 }
 0x249   :  { %148 = vsyncpa [#allocation7], 1 }
 0x24a   :  { %149 = vsyncpa [#allocation5], 1 }

</bundles_post_ra>
